<compile_context>
chip_gen: v7x
topology: tpu7x:2x2x1
jax: 0.10.0
libtpu: 0.0.40
codegen_flags: <defaults>
</compile_context>

<pallas_src>
import functools

import jax
import jax.numpy as jnp
from jax.experimental import pallas as pl
from jax.experimental.pallas import tpu as pltpu


def _critic_kernel(x_ref, w1_ref, b1_ref, w2_ref, b2_ref, w3_ref, b3_ref,
                   o_ref, *, batches_per_tile, num_nodes):
    """Fused 3-layer MLP + mean-over-nodes for one row tile.

    x_ref : (TM, F) with TM = batches_per_tile * num_nodes
    w1    : (F, H), b1 : (1, H)
    w2    : (H, H), b2 : (1, H)
    w3    : (1, H)  lane-dense last-layer weights, b3 : (1, 1)
    o_ref : (TB, 1) per-batch values for this tile
    """
    x = x_ref[...]

    h1 = jnp.dot(x, w1_ref[...], preferred_element_type=jnp.float32) + b1_ref[...]
    h1 = jnp.maximum(h1, 0.0)

    h2 = jnp.dot(h1, w2_ref[...], preferred_element_type=jnp.float32) + b2_ref[...]
    h2 = jnp.maximum(h2, 0.0)                               # (TM, H)

    # Reduce over nodes first (sublane reduce on the lane-dense tensor), then the
    # last Linear as a VPU multiply + lane reduce.  mean(x @ w3 + b3) == mean(x) @ w3 + b3.
    h2_mean = jnp.mean(h2.reshape(batches_per_tile, num_nodes, -1), axis=1)   # (TB, H)
    o_ref[...] = (jnp.sum(h2_mean * w3_ref[...], axis=-1, keepdims=True)
                  + b3_ref[...])                            # (TB, 1)


def _choose_batches_per_tile(B, N, target_rows=1024):
    """Whole batches per tile; TB a divisor of B.  For a multi-tile grid both the
    x row-block (TB*N) and the output block (TB) must be sublane aligned, so we
    require TB % 8 == 0 unless we fall back to a single full-array tile."""
    good = [tb for tb in range(1, B + 1)
            if B % tb == 0 and tb % 8 == 0 and tb * N <= target_rows]
    if good:
        return max(good)
    return B   # single tile: full-array block shapes satisfy the (8,128) rule


def critic_forward(p_net_x, params, *, target_rows=1024):
    """p_net_x: (B, N, F) float32.  Returns (B, 1) float32."""
    B, N, F = p_net_x.shape
    w1, b1, w2, b2, w3, b3 = params
    H = w1.shape[1]

    tb = _choose_batches_per_tile(B, N, target_rows)
    tm = tb * N
    grid = (B // tb,)

    x_flat = p_net_x.reshape(B * N, F)
    b1_2d = b1.reshape(1, H)
    b2_2d = b2.reshape(1, H)
    w3_row = w3.reshape(1, H)          # lane-dense last-layer weights
    b3_2d = b3.reshape(1, 1)

    kernel = functools.partial(_critic_kernel, batches_per_tile=tb, num_nodes=N)

    # VMEM budget: double-buffered x + intermediates + resident params + output.
    tile_bytes = 4 * (2 * tm * F + 2 * tm * H
                      + F * H + H * H + 3 * H + 1 + 2 * tb)
    vmem_limit = int(min(max(4 * tile_bytes, 16 * 1024 * 1024), 64 * 1024 * 1024))

    cost = pl.CostEstimate(
        flops=2 * B * N * (F * H + H * H) + 4 * B * N * H,
        transcendentals=0,
        bytes_accessed=4 * (B * N * F + F * H + H * H + 3 * H + 1 + B),
    )

    out = pl.pallas_call(
        kernel,
        out_shape=jax.ShapeDtypeStruct((B, 1), jnp.float32),
        grid=grid,
        in_specs=[
            pl.BlockSpec((tm, F), lambda i: (i, 0)),   # x row tile
            pl.BlockSpec((F, H), lambda i: (0, 0)),    # w1 (VMEM-resident)
            pl.BlockSpec((1, H), lambda i: (0, 0)),    # b1
            pl.BlockSpec((H, H), lambda i: (0, 0)),    # w2
            pl.BlockSpec((1, H), lambda i: (0, 0)),    # b2
            pl.BlockSpec((1, H), lambda i: (0, 0)),    # w3 (lane-dense)
            pl.BlockSpec((1, 1), lambda i: (0, 0)),    # b3
        ],
        out_specs=pl.BlockSpec((tb, 1), lambda i: (i, 0)),
        compiler_params=pltpu.CompilerParams(
            dimension_semantics=("parallel",),
            vmem_limit_bytes=vmem_limit,
        ),
        cost_estimate=cost,
    )(x_flat, w1, b1_2d, w2, b2_2d, w3_row, b3_2d)
    return out


def init_params(key, feature_dim, embedding_dim):
    """Deterministic synthetic parameters (Linear(F,H), Linear(H,H), Linear(H,1))."""
    k1, k2, k3, k4, k5, k6 = jax.random.split(key, 6)
    w1 = jax.random.normal(k1, (feature_dim, embedding_dim), jnp.float32) * 0.1
    b1 = jax.random.normal(k2, (embedding_dim,), jnp.float32) * 0.01
    w2 = jax.random.normal(k3, (embedding_dim, embedding_dim), jnp.float32) * 0.1
    b2 = jax.random.normal(k4, (embedding_dim,), jnp.float32) * 0.01
    w3 = jax.random.normal(k5, (embedding_dim, 1), jnp.float32) * 0.1
    b3 = jax.random.normal(k6, (1,), jnp.float32) * 0.01
    return (w1, b1, w2, b2, w3, b3)


def _reference(p_net_x, params):
    """Plain-JAX reference of the same forward pass."""
    w1, b1, w2, b2, w3, b3 = params
    h = jnp.maximum(p_net_x @ w1 + b1, 0.0)
    h = jnp.maximum(h @ w2 + b2, 0.0)
    v = h @ w3 + b3                       # (B, N, 1)
    return jnp.mean(v, axis=1)            # (B, 1)


if __name__ == "__main__":
    key = jax.random.PRNGKey(0)
    k_x, k_p, k_x2 = jax.random.split(key, 3)

    B, N, F, H = 2, 8, 16, 32             # batch, physical nodes, feature_dim, embedding_dim
    p_net_x = jax.random.normal(k_x, (B, N, F), jnp.float32)
    params = init_params(k_p, F, H)

    out = jax.block_until_ready(critic_forward(p_net_x, params))
    ref = _reference(p_net_x, params)
    assert out.shape == (B, 1)
    assert jnp.allclose(out, ref, atol=1e-5, rtol=1e-5)

    # Exercise the multi-tile gridded path (TB=128, TM=1024 rows, grid=(2,)).
    B2 = 256
    x2 = jax.random.normal(k_x2, (B2, N, F), jnp.float32)
    out2 = jax.block_until_ready(critic_forward(x2, params))
    ref2 = _reference(x2, params)
    assert out2.shape == (B2, 1)
    assert jnp.allclose(out2, ref2, atol=1e-4, rtol=1e-4)

    print("KERNEL_OK")
</pallas_src>

<mosaic_0001>
module attributes {stable_mosaic.version = 11 : i64} {
  func.func @_critic_kernel(%arg0: i32, %arg1: memref<16x16xf32, #tpu.memory_space<vmem>>, %arg2: memref<16x32xf32, #tpu.memory_space<vmem>>, %arg3: memref<1x32xf32, #tpu.memory_space<vmem>>, %arg4: memref<32x32xf32, #tpu.memory_space<vmem>>, %arg5: memref<1x32xf32, #tpu.memory_space<vmem>>, %arg6: memref<1x32xf32, #tpu.memory_space<vmem>>, %arg7: memref<1x1xf32, #tpu.memory_space<vmem>>, %arg8: memref<2x1xf32, #tpu.memory_space<vmem>>) attributes {dimension_semantics = [#tpu.dimension_semantics<parallel>], iteration_bounds = array<i64: 1>, scalar_prefetch = 0 : i64, scratch_operands = 0 : i64, tpu.core_type = #tpu.core_type<tc>, window_params = [{transform_indices = @transform_0, window_bounds = array<i64: 16, 16>}, {pipeline_mode = #tpu.pipeline_mode<synchronous>, transform_indices = @transform_1, window_bounds = array<i64: 16, 32>}, {pipeline_mode = #tpu.pipeline_mode<synchronous>, transform_indices = @transform_2, window_bounds = array<i64: 1, 32>}, {pipeline_mode = #tpu.pipeline_mode<synchronous>, transform_indices = @transform_3, window_bounds = array<i64: 32, 32>}, {pipeline_mode = #tpu.pipeline_mode<synchronous>, transform_indices = @transform_4, window_bounds = array<i64: 1, 32>}, {pipeline_mode = #tpu.pipeline_mode<synchronous>, transform_indices = @transform_5, window_bounds = array<i64: 1, 32>}, {pipeline_mode = #tpu.pipeline_mode<synchronous>, transform_indices = @transform_6, window_bounds = array<i64: 1, 1>}, {transform_indices = @transform_7, window_bounds = array<i64: 2, 1>}]} {
    %c0 = arith.constant 0 : index
    %c0_0 = arith.constant 0 : index
    %0 = vector.load %arg1[%c0, %c0_0] : memref<16x16xf32, #tpu.memory_space<vmem>>, vector<16x16xf32>
    %c0_1 = arith.constant 0 : index
    %c0_2 = arith.constant 0 : index
    %1 = vector.load %arg2[%c0_1, %c0_2] : memref<16x32xf32, #tpu.memory_space<vmem>>, vector<16x32xf32>
    %cst = arith.constant dense<0.000000e+00> : vector<16x32xf32>
    %2 = tpu.matmul %0, %1, %cst {dimension_numbers = #tpu.dot_dimension_numbers<[1], [0], [0], [1], [0, 0, 1, 1], [], []>} : vector<16x16xf32>, vector<16x32xf32>, vector<16x32xf32> -> vector<16x32xf32>
    %c0_3 = arith.constant 0 : index
    %c0_4 = arith.constant 0 : index
    %3 = vector.load %arg3[%c0_3, %c0_4] : memref<1x32xf32, #tpu.memory_space<vmem>>, vector<1x32xf32>
    %4 = vector.broadcast %3 : vector<1x32xf32> to vector<16x32xf32>
    %5 = arith.addf %2, %4 : vector<16x32xf32>
    %cst_5 = arith.constant 0.000000e+00 : f32
    %6 = vector.broadcast %cst_5 : f32 to vector<16x32xf32>
    %7 = arith.maximumf %5, %6 : vector<16x32xf32>
    %c0_6 = arith.constant 0 : index
    %c0_7 = arith.constant 0 : index
    %8 = vector.load %arg4[%c0_6, %c0_7] : memref<32x32xf32, #tpu.memory_space<vmem>>, vector<32x32xf32>
    %cst_8 = arith.constant dense<0.000000e+00> : vector<16x32xf32>
    %9 = tpu.matmul %7, %8, %cst_8 {dimension_numbers = #tpu.dot_dimension_numbers<[1], [0], [0], [1], [0, 0, 1, 1], [], []>} : vector<16x32xf32>, vector<32x32xf32>, vector<16x32xf32> -> vector<16x32xf32>
    %c0_9 = arith.constant 0 : index
    %c0_10 = arith.constant 0 : index
    %10 = vector.load %arg5[%c0_9, %c0_10] : memref<1x32xf32, #tpu.memory_space<vmem>>, vector<1x32xf32>
    %11 = vector.broadcast %10 : vector<1x32xf32> to vector<16x32xf32>
    %12 = arith.addf %9, %11 : vector<16x32xf32>
    %cst_11 = arith.constant 0.000000e+00 : f32
    %13 = vector.broadcast %cst_11 : f32 to vector<16x32xf32>
    %14 = arith.maximumf %12, %13 : vector<16x32xf32>
    %15 = vector.shape_cast %14 : vector<16x32xf32> to vector<2x8x32xf32>
    %cst_12 = arith.constant dense<0.000000e+00> : vector<2x32xf32>
    %16 = vector.multi_reduction <add>, %15, %cst_12 [1] : vector<2x8x32xf32> to vector<2x32xf32>
    %cst_13 = arith.constant 8.000000e+00 : f32
    %17 = vector.broadcast %cst_13 : f32 to vector<2x32xf32>
    %18 = arith.divf %16, %17 : vector<2x32xf32>
    %c0_14 = arith.constant 0 : index
    %c0_15 = arith.constant 0 : index
    %19 = vector.load %arg6[%c0_14, %c0_15] : memref<1x32xf32, #tpu.memory_space<vmem>>, vector<1x32xf32>
    %20 = vector.broadcast %19 : vector<1x32xf32> to vector<2x32xf32>
    %21 = arith.mulf %18, %20 : vector<2x32xf32>
    %cst_16 = arith.constant dense<0.000000e+00> : vector<2xf32>
    %22 = vector.multi_reduction <add>, %21, %cst_16 [1] : vector<2x32xf32> to vector<2xf32>
    %23 = vector.shape_cast %22 : vector<2xf32> to vector<2x1xf32>
    %c0_17 = arith.constant 0 : index
    %c0_18 = arith.constant 0 : index
    %24 = vector.load %arg7[%c0_17, %c0_18] : memref<1x1xf32, #tpu.memory_space<vmem>>, vector<1x1xf32>
    %25 = vector.broadcast %24 : vector<1x1xf32> to vector<2x1xf32>
    %26 = arith.addf %23, %25 : vector<2x1xf32>
    %c0_19 = arith.constant 0 : index
    %c0_20 = arith.constant 0 : index
    %27 = vector.load %arg8[%c0_19, %c0_20] : memref<2x1xf32, #tpu.memory_space<vmem>>, vector<2x1xf32>
    tpu.vector_store %arg8[%c0_19, %c0_20], %26 {strides = array<i32>} : memref<2x1xf32, #tpu.memory_space<vmem>>, vector<2x1xf32>,
    return
  }
  func.func @transform_0(%arg0: i32) -> (i32, i32) {
    %c0_i32 = arith.constant 0 : i32
    %c0_i32_0 = arith.constant 0 : i32
    return %arg0, %c0_i32 : i32, i32
  }
  func.func @transform_1(%arg0: i32) -> (i32, i32) {
    %c0_i32 = arith.constant 0 : i32
    %c0_i32_0 = arith.constant 0 : i32
    %c0_i32_1 = arith.constant 0 : i32
    return %c0_i32, %c0_i32_0 : i32, i32
  }
  func.func @transform_2(%arg0: i32) -> (i32, i32) {
    %c0_i32 = arith.constant 0 : i32
    %c0_i32_0 = arith.constant 0 : i32
    %c0_i32_1 = arith.constant 0 : i32
    return %c0_i32, %c0_i32_0 : i32, i32
  }
  func.func @transform_3(%arg0: i32) -> (i32, i32) {
    %c0_i32 = arith.constant 0 : i32
    %c0_i32_0 = arith.constant 0 : i32
    %c0_i32_1 = arith.constant 0 : i32
    return %c0_i32, %c0_i32_0 : i32, i32
  }
  func.func @transform_4(%arg0: i32) -> (i32, i32) {
    %c0_i32 = arith.constant 0 : i32
    %c0_i32_0 = arith.constant 0 : i32
    %c0_i32_1 = arith.constant 0 : i32
    return %c0_i32, %c0_i32_0 : i32, i32
  }
  func.func @transform_5(%arg0: i32) -> (i32, i32) {
    %c0_i32 = arith.constant 0 : i32
    %c0_i32_0 = arith.constant 0 : i32
    %c0_i32_1 = arith.constant 0 : i32
    return %c0_i32, %c0_i32_0 : i32, i32
  }
  func.func @transform_6(%arg0: i32) -> (i32, i32) {
    %c0_i32 = arith.constant 0 : i32
    %c0_i32_0 = arith.constant 0 : i32
    %c0_i32_1 = arith.constant 0 : i32
    return %c0_i32, %c0_i32_0 : i32, i32
  }
  func.func @transform_7(%arg0: i32) -> (i32, i32) {
    %c0_i32 = arith.constant 0 : i32
    %c0_i32_0 = arith.constant 0 : i32
    return %arg0, %c0_i32 : i32, i32
  }
}

</mosaic_0001>

<bundles_post_ra>
// kernel: tpu_custom_call.1
= control target key start
LH: loop header
LB: loop body
LE: loop exit
PB: predicated region body
PF: predicated region fallthrough
CT: control target
= control target key end

     0   :  { %s546_s0 = inlined_call_operand.hbm [shape: f32[16,16], index: 0, kind: input, shape index: {}]   ;;  %s547_s1 = inlined_call_operand.hbm [shape: f32[16,32], index: 1, kind: input, shape index: {}]   ;;  %s548_s2 = inlined_call_operand.vmem [shape: f32[1,32], index: 2, kind: input, shape index: {}]   ;;  %s549_s3 = inlined_call_operand.hbm [shape: f32[32,32], index: 3, kind: input, shape index: {}]   ;;  %s550_s4 = inlined_call_operand.vmem [shape: f32[1,32], index: 4, kind: input, shape index: {}]   ;;  %s551_s5 = inlined_call_operand.vmem [shape: f32[1,32], index: 5, kind: input, shape index: {}]   ;;  %s552_s6 = inlined_call_operand.<no memory space> [shape: f32[1,1], index: 6, kind: input, shape index: {}]   ;;  %s553_s7 = inlined_call_operand.vmem [shape: f32[2,1], index: 7, kind: output, shape index: {}]  }
   0x1   :  { %v12_v0 = vstv %s552_s6 }
   0x2   :  { %13 = vst [vmem:[#allocation2] sm:$0x1] %v12_v0 }
   0x3   :  { %14 = vsyncpa [#allocation4], 0 }
   0x4   :  { %15 = vsyncpa [#allocation6], 0  ;;  %s434_s26 = smov [#allocation5]   ;;  %s435_s28 = smov [#allocation3]  }
   0x5   :  { %s33_s27 = sshll.u32 %s434_s26, 4  ;;  %s21_s29 = sshll.u32 %s435_s28, 4  ;;  %s34_s27 = int_to_ptr.vmem [resolvable:$true] %s33_s27  ;;  %s482_s29 = int_to_ptr.vmem [resolvable:$true] %s21_s29 }
   0x6   :  { %s364_s9 = scalar_lea.hbm %s547_s1, 256 }
   0x7   :  { %p365_p0 = scmp.ne.s32.totalorder %s547_s1, %s364_s9  ;;  %p368_p1 = scmp.lt.u32.totalorder %s364_s9, %s547_s1 }
   0x9   :  { %p370_p2 = pnand %p368_p1, %p365_p0 }
   0xb   :  { %373 = shalt.err (!%p370_p2)
}
   0xc   :  { %s374_s13 = scalar_lea.vmem %s34_s27, 256  ;;  %p379_p4 = scmp.lt.s32.totalorder %s34_s27, %s34_s27 }
   0xd   :  { %p375_p3 = scmp.ne.s32.totalorder %s34_s27, %s374_s13  ;;  %p380_p5 = scmp.lt.s32.totalorder %s374_s13, %s374_s13 }
   0xf   :  { %p381_p6 = por %p380_p5, %p379_p4 }
  0x11   :  { %p382_p7 = pnand %p381_p6, %p375_p3 }
  0x13   :  { %385 = shalt.err (!%p382_p7)
}
  0x14   :  { %s436_s14 = smov 128   ;;  %s437_s15 = smov 8  }
  0x15   :  { %39 = dma.hbm_to_vmem [thread:$0]  %s547_s1, 256, %s34_s27, [#allocation6], %s436_s14, %s436_s14, %s437_s15  }
  0x16   :  { %s386_s20 = scalar_lea.hbm %s546_s0, 256 }
  0x17   :  { %p387_p8 = scmp.ne.s32.totalorder %s546_s0, %s386_s20  ;;  %p390_p9 = scmp.lt.u32.totalorder %s386_s20, %s546_s0 }
  0x19   :  { %p392_p10 = pnand %p390_p9, %p387_p8 }
  0x1b   :  { %395 = shalt.err (!%p392_p10)
}
  0x1c   :  { %s396_s25 = scalar_lea.vmem %s482_s29, 256  ;;  %p401_p12 = scmp.lt.s32.totalorder %s482_s29, %s482_s29 }
  0x1d   :  { %p397_p11 = scmp.ne.s32.totalorder %s482_s29, %s396_s25  ;;  %p402_p13 = scmp.lt.s32.totalorder %s396_s25, %s396_s25 }
  0x1f   :  { %p403_p0 = por %p402_p13, %p401_p12 }
  0x21   :  { %p404_p1 = pnand %p403_p0, %p397_p11 }
  0x23   :  { %407 = shalt.err (!%p404_p1)
}
  0x24   :  { %27 = dma.hbm_to_vmem [thread:$0]  %s546_s0, 256, %s482_s29, [#allocation4], %s436_s14, %s436_s14, %s437_s15  }
  0x25   :  { %s438_s27 = smov [#allocation7]   ;;  %s408_s9 = scalar_lea.hbm %s549_s3, 512 }
  0x26   :  { %s47_s28 = sshll.u32 %s438_s27, 4  ;;  %p409_p2 = scmp.ne.s32.totalorder %s549_s3, %s408_s9  ;;  %s48_s28 = int_to_ptr.vmem [resolvable:$true] %s47_s28 }
  0x27   :  { %p412_p3 = scmp.lt.u32.totalorder %s408_s9, %s549_s3 }
  0x29   :  { %p414_p4 = pnand %p412_p3, %p409_p2 }
  0x2b   :  { %417 = shalt.err (!%p414_p4)
}
  0x2c   :  { %s418_s13 = scalar_lea.vmem %s48_s28, 512  ;;  %p423_p6 = scmp.lt.s32.totalorder %s48_s28, %s48_s28 }
  0x2d   :  { %p419_p5 = scmp.ne.s32.totalorder %s48_s28, %s418_s13  ;;  %p424_p7 = scmp.lt.s32.totalorder %s418_s13, %s418_s13 }
  0x2f   :  { %p425_p8 = por %p424_p7, %p423_p6 }
  0x31   :  { %p426_p9 = pnand %p425_p8, %p419_p5 }
  0x33   :  { %429 = shalt.err (!%p426_p9)
}
  0x34   :  { %53 = dma.hbm_to_vmem [thread:$0]  %s549_s3, 512, %s48_s28, [#allocation6], %s436_s14, %s436_s14, %s437_s15  }
  0x35   :  { %430 = dma.done.wait [#allocation4], 256  }
  0x36   :  { %431 = vsyncadd [#allocation4], 4294967040 }
  0x37   :  { %432 = dma.done.wait [#allocation6], 768  }
  0x38   :  { %433 = vsyncadd [#allocation6], 4294966528  ;;  %vm80_vm0 = vcmask 130048   ;;  %v71_v1 = vld [vmem:[#allocation5] sm:$0xff]  ;;  %v72_v2 = vld [vmem:[#allocation5 + $0x8] sm:$0xff]  ;;  %vm175_vm1 = vcmask 261120  }
  0x39   :  { %v69_v3 = vld [vmem:[#allocation3] sm:$0xff]  ;;  %v347_v4 = vpack.c.bf16 %v72_v2, %v71_v1  ;;  %v165_v6 = vld [vmem:[#allocation7 + $0x8] sm:$0xff]  ;;  %v166_v9 = vld [vmem:[#allocation7 + $0x10] sm:$0xff]  ;;  %vm288_vm2 = vcmask 1041409   ;;  %vm291_vm3 = vcmask 254976   ;;  %vm303_vm4 = vcmask 1024  }
  0x3a   :  { %333 = vmatprep.mubr.msk.f32.mxu0 %vm80_vm0, %v69_v3  ;;  %v164_v5 = vld [vmem:[#allocation7] sm:$0xff]  ;;  %v70_v8 = vld [vmem:[#allocation3 + $0x8] sm:$0xff]  ;;  %v167_v10 = vld [vmem:[#allocation7 + $0x18] sm:$0xff] }
  0x3b   :  { %v351_v7 = vpack.c.bf16 %v165_v6, %v164_v5  ;;  %348 = vmatprep.subr.bf16.mxu0 %v347_v4  ;;  %v355_v11 = vpack.c.bf16 %v167_v10, %v166_v9  ;;  %v311_v12 = vld [vmem:[%s548_s2] ss:$0 sm:$0xff] }
  0x3c   :  { %350 = vmatpush3.bf16.msra.mxu0 %v347_v4  ;;  %v314_v19 = vld [vmem:[%s550_s4] ss:$0 sm:$0xff] }
  0x3d   :  { %352 = vmatprep.subr.bf16.mxu1 %v351_v7  ;;  %v317_v40 = vld [vmem:[%s551_s5] ss:$0 sm:$0xff] }
  0x3e   :  { %354 = vmatpush3.bf16.msra.mxu1 %v351_v7  ;;  %v318_v48 = vld [vmem:[#allocation2] ss:$0 sm:$0xff] }
  0x3f   :  { %334 = vmatmul.mubr.msk.f32.vlgmr.msra.gmra.mrb[0].mxu0 %vm80_vm0, %v70_v8  ;;  %356 = vmatprep.subr.bf16.mxu1 %v355_v11 }
  0x42   :  { %358 = vmatpush3.bf16.msra.mxu1 %v355_v11 }
 0x112   :  { %v335_v13 = vpop.f32.mrb[0].mxu0 }
 0x113   :  { %v159_v14 = vadd.f32 %v335_v13, %v311_v12  ;;  %v153_v15 = vpop.f32.mrb[1].mxu0 }
 0x114   :  { %v154_v16 = vadd.f32 %v311_v12, %v153_v15 }
 0x115   :  { %v163_v18 = vmax.f32 %v159_v14, 0.0 }
 0x116   :  { %v162_v17 = vmax.f32 %v154_v16, 0.0 }
 0x118   :  { %344 = vmatprep.mubr.msk.f32.mxu1 %vm175_vm1, %v162_v17 }
 0x119   :  { %345 = vmatmul.mubr.msk.f32.vlgmr.msra.gmra.mrb[0].mxu1 %vm175_vm1, %v163_v18 }
 0x1ec   :  { %v346_v20 = vpop.f32.mrb[0].mxu1 }
 0x1ed   :  { %v254_v21 = vadd.f32 %v346_v20, %v314_v19  ;;  %v248_v22 = vpop.f32.mrb[1].mxu1 }
 0x1ee   :  { %v249_v23 = vadd.f32 %v314_v19, %v248_v22 }
 0x1ef   :  { %v258_v24 = vmax.f32 %v254_v21, 0.0 }
 0x1f0   :  { %v257_v25 = vmax.f32 %v249_v23, 0.0 }
 0x1f1   :  { %v266_v26 = vsel %vm175_vm1, %v258_v24, 0.0 }
 0x1f2   :  { %v267_v27 = vrot.slane %v266_v26, 4  ;;  %v259_v28 = vsel %vm175_vm1, %v257_v25, 0.0 }
 0x1f3   :  { %v260_v29 = vrot.slane %v259_v28, 4 }
 0x1f4   :  { %v268_v30 = vadd.f32 %v267_v27, %v266_v26 }
 0x1f5   :  { %v261_v31 = vadd.f32 %v260_v29, %v259_v28 }
 0x1f6   :  { %v269_v32 = vrot.slane %v268_v30, 2 }
 0x1f7   :  { %v262_v33 = vrot.slane %v261_v31, 2 }
 0x1f8   :  { %v270_v34 = vadd.f32 %v269_v32, %v268_v30 }
 0x1f9   :  { %v263_v35 = vadd.f32 %v262_v33, %v261_v31 }
 0x1fa   :  { %v271_v36 = vrot.slane %v270_v34, 1 }
 0x1fb   :  { %v264_v37 = vrot.slane %v263_v35, 1 }
 0x1fc   :  { %v272_v38 = vadd.f32 %v271_v36, %v270_v34 }
 0x1fd   :  { %v265_v39 = vadd.f32 %v264_v37, %v263_v35 }
 0x1fe   :  { %v275_v41 = vmul.f32 0.125, %v272_v38 }
 0x1ff   :  { %v274_v42 = vmul.f32 0.125, %v265_v39 }
 0x200   :  { %v284_v43 = vmul.f32 %v317_v40, %v275_v41 }
 0x201   :  { %v283_v44 = vmul.f32 %v317_v40, %v274_v42 }
 0x202   :  { %v287_v45 = vrot.slane %v284_v43, 7 }
 0x204   :  { %v289_v46 = vsel %vm288_vm2, %v287_v45, %v283_v44 }
 0x205   :  { %v292_v47 = vsel %vm291_vm3, %v289_v46, 0.0 }
 0x206   :  { %293 = vadd.xlane.f32.xlu0 %v292_v47 }
 0x293   :  { %v294_v49 = vpop.xlane.xlu0 %293 }
 0x294   :  { %v302_v50 = vadd.f32 %v318_v48, %v294_v49 }
 0x296   :  { %304 = vst.msk [vmem:[%s553_s7] sm:$0x3] %vm303_vm4, %v302_v50 }
 0x297   :  { %309 = vsyncpa [#allocation4], 1 }
 0x298   :  { %310 = vsyncpa [#allocation6], 1 }

</bundles_post_ra>
